<compile_context>
chip_gen: v7x
topology: tpu7x:2x2x1
jax: 0.10.0
libtpu: 0.0.40
codegen_flags: <defaults>
</compile_context>

<pallas_src>
import math
import jax
import jax.numpy as jnp
from jax import lax
from jax.experimental import pallas as pl
from jax.experimental.pallas import tpu as pltpu


def _mha_fused_kernel(q_ref, k_ref, v_ref,
                      wq_ref, bq_ref, wk_ref, bk_ref, wv_ref, bv_ref,
                      wo_ref, bo_ref,
                      out_ref, *, d_k, d_v, h, scale):
    # All-head projections in one matmul each (bf16 operands, f32 accumulate).
    pq = jnp.dot(q_ref[...], wq_ref[...], preferred_element_type=jnp.float32) + bq_ref[...]
    pk = jnp.dot(k_ref[...], wk_ref[...], preferred_element_type=jnp.float32) + bk_ref[...]
    pv = jnp.dot(v_ref[...], wv_ref[...], preferred_element_type=jnp.float32) + bv_ref[...]

    attn_heads = []
    for i in range(h):  # h is a small static constant -> fully unrolled
        pq_h = pq[:, i * d_k:(i + 1) * d_k].astype(jnp.bfloat16)
        pk_h = pk[:, i * d_k:(i + 1) * d_k].astype(jnp.bfloat16)
        pv_h = pv[:, i * d_v:(i + 1) * d_v].astype(jnp.bfloat16)

        # scores (Sq, Sk): contract dim 1 of both operands (no explicit K.T)
        s = lax.dot_general(pq_h, pk_h, (((1,), (1,)), ((), ())),
                            preferred_element_type=jnp.float32) * scale
        # TODO(synk): mask (masked_fill with -inf) not implemented; module is called with mask=None.

        # softmax over dim=1 (key axis for 2-D inputs), kept in f32
        m = jnp.max(s, axis=1, keepdims=True)
        e = jnp.exp(s - m)
        w = e * pl.reciprocal(jnp.sum(e, axis=1, keepdims=True), approx=True)

        attn_heads.append(jnp.dot(w.astype(jnp.bfloat16), pv_h,
                                  preferred_element_type=jnp.float32))

    # concat(heads) @ Wo  (== cat(attn_i) @ weight_o) in a single wide matmul
    attn = jnp.concatenate(attn_heads, axis=-1).astype(jnp.bfloat16)
    out = jnp.dot(attn, wo_ref[...], preferred_element_type=jnp.float32) + bo_ref[...]
    out_ref[...] = out.astype(out_ref.dtype)


def multihead_attention(q, k, v, params, *, d_k, d_v, h, block_q=None):
    S, d_model = q.shape
    wq, bq, wk, bk, wv, bv, wo_split, bo = params

    # Stack per-head weights along the output dim (head-major column order),
    # cast MXU operands to bf16 (halves HBM->VMEM bytes too); biases stay f32.
    wq_all = jnp.transpose(wq, (1, 0, 2)).reshape(d_model, h * d_k).astype(jnp.bfloat16)
    wk_all = jnp.transpose(wk, (1, 0, 2)).reshape(d_model, h * d_k).astype(jnp.bfloat16)
    wv_all = jnp.transpose(wv, (1, 0, 2)).reshape(d_model, h * d_v).astype(jnp.bfloat16)
    wo_all = wo_split.reshape(h * d_v, d_model).astype(jnp.bfloat16)
    bq_all = bq.reshape(1, h * d_k).astype(jnp.float32)
    bk_all = bk.reshape(1, h * d_k).astype(jnp.float32)
    bv_all = bv.reshape(1, h * d_v).astype(jnp.float32)
    bo_2d = bo.reshape(1, d_model).astype(jnp.float32)

    qb = q.astype(jnp.bfloat16)
    kb = k.astype(jnp.bfloat16)
    vb = v.astype(jnp.bfloat16)

    # Query-axis grid ("parallel"): one block here; splits across v7x's 2 TCs at large S.
    if block_q is None:
        block_q = S if S <= 256 else 256
    nq = pl.cdiv(S, block_q)

    kernel = lambda *refs: _mha_fused_kernel(
        *refs, d_k=d_k, d_v=d_v, h=h, scale=1.0 / math.sqrt(d_v))

    def full(shape):
        return pl.BlockSpec(shape, lambda i: (0,) * len(shape))

    return pl.pallas_call(
        kernel,
        out_shape=jax.ShapeDtypeStruct((S, d_model), q.dtype),
        grid_spec=pltpu.PrefetchScalarGridSpec(
            num_scalar_prefetch=0,
            grid=(nq,),
            in_specs=[
                pl.BlockSpec((block_q, d_model), lambda i: (i, 0)),   # q block
                full((S, d_model)),            # k (full)
                full((S, d_model)),            # v (full)
                full((d_model, h * d_k)),      # Wq stacked
                full((1, h * d_k)),            # bq
                full((d_model, h * d_k)),      # Wk stacked
                full((1, h * d_k)),            # bk
                full((d_model, h * d_v)),      # Wv stacked
                full((1, h * d_v)),            # bv
                full((h * d_v, d_model)),      # Wo stacked
                full((1, d_model)),            # bo
            ],
            out_specs=pl.BlockSpec((block_q, d_model), lambda i: (i, 0)),
        ),
        compiler_params=pltpu.CompilerParams(
            dimension_semantics=("parallel",)),
    )(qb, kb, vb, wq_all, bq_all, wk_all, bk_all, wv_all, bv_all, wo_all, bo_2d)


def _reference(q, k, v, params, *, d_v, h):
    wq, bq, wk, bk, wv, bv, wo_split, bo = params
    outs = []
    for i in range(h):
        pq = q @ wq[i] + bq[i]
        pk = k @ wk[i] + bk[i]
        pv = v @ wv[i] + bv[i]
        score = (pq @ pk.T) / math.sqrt(d_v)
        w = jax.nn.softmax(score, axis=1)
        outs.append(w @ pv)
    attn = jnp.concatenate(outs, axis=-1)
    wo = jnp.concatenate([wo_split[i] for i in range(h)], axis=0)  # (h*d_v, d_model)
    return attn @ wo + bo[0]


if __name__ == "__main__":
    d_model, d_k, d_v, h, S = 32, 16, 16, 4, 8

    key = jax.random.PRNGKey(0)
    keys = jax.random.split(key, 12)

    q = jax.random.normal(keys[0], (S, d_model), jnp.float32)
    k = jax.random.normal(keys[1], (S, d_model), jnp.float32)
    v = jax.random.normal(keys[2], (S, d_model), jnp.float32)

    # Deterministic parameter init (nn.Linear(in, out) with W stored transposed).
    wq = jax.random.normal(keys[3], (h, d_model, d_k), jnp.float32) * 0.1
    bq = jax.random.normal(keys[4], (h, d_k), jnp.float32) * 0.1
    wk = jax.random.normal(keys[5], (h, d_model, d_k), jnp.float32) * 0.1
    bk = jax.random.normal(keys[6], (h, d_k), jnp.float32) * 0.1
    wv = jax.random.normal(keys[7], (h, d_model, d_v), jnp.float32) * 0.1
    bv = jax.random.normal(keys[8], (h, d_v), jnp.float32) * 0.1
    wo_split = jax.random.normal(keys[9], (h, d_v, d_model), jnp.float32) * 0.1
    bo = jax.random.normal(keys[10], (1, d_model), jnp.float32) * 0.1

    params = (wq, bq, wk, bk, wv, bv, wo_split, bo)

    out = multihead_attention(q, k, v, params, d_k=d_k, d_v=d_v, h=h)
    out = jax.block_until_ready(out)

    ref = _reference(q, k, v, params, d_v=d_v, h=h)
    assert out.shape == (S, d_model)
    # Tolerance loosened vs the pure-f32 version because MXU operands are bf16
    # (accumulation stays f32); per the review this is the intended trade-off.
    assert jnp.allclose(out, ref, atol=3e-2, rtol=3e-2), "mismatch vs pure-JAX reference"

    print("KERNEL_OK")
</pallas_src>

<mosaic_0001>
module attributes {stable_mosaic.version = 11 : i64} {
  func.func @_lambda_(%arg0: i32, %arg1: memref<8x32xbf16, #tpu.memory_space<vmem>>, %arg2: memref<8x32xbf16, #tpu.memory_space<vmem>>, %arg3: memref<8x32xbf16, #tpu.memory_space<vmem>>, %arg4: memref<32x64xbf16, #tpu.memory_space<vmem>>, %arg5: memref<1x64xf32, #tpu.memory_space<vmem>>, %arg6: memref<32x64xbf16, #tpu.memory_space<vmem>>, %arg7: memref<1x64xf32, #tpu.memory_space<vmem>>, %arg8: memref<32x64xbf16, #tpu.memory_space<vmem>>, %arg9: memref<1x64xf32, #tpu.memory_space<vmem>>, %arg10: memref<64x32xbf16, #tpu.memory_space<vmem>>, %arg11: memref<1x32xf32, #tpu.memory_space<vmem>>, %arg12: memref<8x32xf32, #tpu.memory_space<vmem>>) attributes {dimension_semantics = [#tpu.dimension_semantics<parallel>], iteration_bounds = array<i64: 1>, scalar_prefetch = 0 : i64, scratch_operands = 0 : i64, tpu.core_type = #tpu.core_type<tc>, window_params = [{transform_indices = @transform_0, window_bounds = array<i64: 8, 32>}, {pipeline_mode = #tpu.pipeline_mode<synchronous>, transform_indices = @transform_1, window_bounds = array<i64: 8, 32>}, {pipeline_mode = #tpu.pipeline_mode<synchronous>, transform_indices = @transform_2, window_bounds = array<i64: 8, 32>}, {pipeline_mode = #tpu.pipeline_mode<synchronous>, transform_indices = @transform_3, window_bounds = array<i64: 32, 64>}, {pipeline_mode = #tpu.pipeline_mode<synchronous>, transform_indices = @transform_4, window_bounds = array<i64: 1, 64>}, {pipeline_mode = #tpu.pipeline_mode<synchronous>, transform_indices = @transform_5, window_bounds = array<i64: 32, 64>}, {pipeline_mode = #tpu.pipeline_mode<synchronous>, transform_indices = @transform_6, window_bounds = array<i64: 1, 64>}, {pipeline_mode = #tpu.pipeline_mode<synchronous>, transform_indices = @transform_7, window_bounds = array<i64: 32, 64>}, {pipeline_mode = #tpu.pipeline_mode<synchronous>, transform_indices = @transform_8, window_bounds = array<i64: 1, 64>}, {pipeline_mode = #tpu.pipeline_mode<synchronous>, transform_indices = @transform_9, window_bounds = array<i64: 64, 32>}, {pipeline_mode = #tpu.pipeline_mode<synchronous>, transform_indices = @transform_10, window_bounds = array<i64: 1, 32>}, {transform_indices = @transform_11, window_bounds = array<i64: 8, 32>}]} {
    %c0 = arith.constant 0 : index
    %c0_0 = arith.constant 0 : index
    %0 = vector.load %arg1[%c0, %c0_0] : memref<8x32xbf16, #tpu.memory_space<vmem>>, vector<8x32xbf16>
    %c0_1 = arith.constant 0 : index
    %c0_2 = arith.constant 0 : index
    %1 = vector.load %arg4[%c0_1, %c0_2] : memref<32x64xbf16, #tpu.memory_space<vmem>>, vector<32x64xbf16>
    %cst = arith.constant dense<0.000000e+00> : vector<8x64xf32>
    %2 = tpu.matmul %0, %1, %cst {dimension_numbers = #tpu.dot_dimension_numbers<[1], [0], [0], [1], [0, 0, 1, 1], [], []>} : vector<8x32xbf16>, vector<32x64xbf16>, vector<8x64xf32> -> vector<8x64xf32>
    %c0_3 = arith.constant 0 : index
    %c0_4 = arith.constant 0 : index
    %3 = vector.load %arg5[%c0_3, %c0_4] : memref<1x64xf32, #tpu.memory_space<vmem>>, vector<1x64xf32>
    %4 = vector.broadcast %3 : vector<1x64xf32> to vector<8x64xf32>
    %5 = arith.addf %2, %4 : vector<8x64xf32>
    %c0_5 = arith.constant 0 : index
    %c0_6 = arith.constant 0 : index
    %6 = vector.load %arg2[%c0_5, %c0_6] : memref<8x32xbf16, #tpu.memory_space<vmem>>, vector<8x32xbf16>
    %c0_7 = arith.constant 0 : index
    %c0_8 = arith.constant 0 : index
    %7 = vector.load %arg6[%c0_7, %c0_8] : memref<32x64xbf16, #tpu.memory_space<vmem>>, vector<32x64xbf16>
    %cst_9 = arith.constant dense<0.000000e+00> : vector<8x64xf32>
    %8 = tpu.matmul %6, %7, %cst_9 {dimension_numbers = #tpu.dot_dimension_numbers<[1], [0], [0], [1], [0, 0, 1, 1], [], []>} : vector<8x32xbf16>, vector<32x64xbf16>, vector<8x64xf32> -> vector<8x64xf32>
    %c0_10 = arith.constant 0 : index
    %c0_11 = arith.constant 0 : index
    %9 = vector.load %arg7[%c0_10, %c0_11] : memref<1x64xf32, #tpu.memory_space<vmem>>, vector<1x64xf32>
    %10 = vector.broadcast %9 : vector<1x64xf32> to vector<8x64xf32>
    %11 = arith.addf %8, %10 : vector<8x64xf32>
    %c0_12 = arith.constant 0 : index
    %c0_13 = arith.constant 0 : index
    %12 = vector.load %arg3[%c0_12, %c0_13] : memref<8x32xbf16, #tpu.memory_space<vmem>>, vector<8x32xbf16>
    %c0_14 = arith.constant 0 : index
    %c0_15 = arith.constant 0 : index
    %13 = vector.load %arg8[%c0_14, %c0_15] : memref<32x64xbf16, #tpu.memory_space<vmem>>, vector<32x64xbf16>
    %cst_16 = arith.constant dense<0.000000e+00> : vector<8x64xf32>
    %14 = tpu.matmul %12, %13, %cst_16 {dimension_numbers = #tpu.dot_dimension_numbers<[1], [0], [0], [1], [0, 0, 1, 1], [], []>} : vector<8x32xbf16>, vector<32x64xbf16>, vector<8x64xf32> -> vector<8x64xf32>
    %c0_17 = arith.constant 0 : index
    %c0_18 = arith.constant 0 : index
    %15 = vector.load %arg9[%c0_17, %c0_18] : memref<1x64xf32, #tpu.memory_space<vmem>>, vector<1x64xf32>
    %16 = vector.broadcast %15 : vector<1x64xf32> to vector<8x64xf32>
    %17 = arith.addf %14, %16 : vector<8x64xf32>
    %18 = vector.extract_strided_slice %5 {offsets = [0, 0], sizes = [8, 16], strides = [1, 1]} : vector<8x64xf32> to vector<8x16xf32>
    %19 = arith.truncf %18 : vector<8x16xf32> to vector<8x16xbf16>
    %20 = vector.extract_strided_slice %11 {offsets = [0, 0], sizes = [8, 16], strides = [1, 1]} : vector<8x64xf32> to vector<8x16xf32>
    %21 = arith.truncf %20 : vector<8x16xf32> to vector<8x16xbf16>
    %22 = vector.extract_strided_slice %17 {offsets = [0, 0], sizes = [8, 16], strides = [1, 1]} : vector<8x64xf32> to vector<8x16xf32>
    %23 = arith.truncf %22 : vector<8x16xf32> to vector<8x16xbf16>
    %cst_19 = arith.constant dense<0.000000e+00> : vector<8x8xf32>
    %24 = tpu.matmul %19, %21, %cst_19 {dimension_numbers = #tpu.dot_dimension_numbers<[1], [1], [0], [0], [0, 0, 1, 0], [], []>} : vector<8x16xbf16>, vector<8x16xbf16>, vector<8x8xf32> -> vector<8x8xf32>
    %cst_20 = arith.constant 2.500000e-01 : f32
    %25 = vector.broadcast %cst_20 : f32 to vector<8x8xf32>
    %26 = arith.mulf %24, %25 : vector<8x8xf32>
    %cst_21 = arith.constant dense<0xFF800000> : vector<8xf32>
    %27 = vector.multi_reduction <maximumf>, %26, %cst_21 [1] : vector<8x8xf32> to vector<8xf32>
    %28 = vector.shape_cast %27 : vector<8xf32> to vector<8x1xf32>
    %29 = vector.broadcast %28 : vector<8x1xf32> to vector<8x8xf32>
    %30 = arith.subf %26, %29 : vector<8x8xf32>
    %31 = math.exp %30 : vector<8x8xf32>
    %cst_22 = arith.constant dense<0.000000e+00> : vector<8xf32>
    %32 = vector.multi_reduction <add>, %31, %cst_22 [1] : vector<8x8xf32> to vector<8xf32>
    %33 = vector.shape_cast %32 : vector<8xf32> to vector<8x1xf32>
    %34 = tpu.reciprocal %33 {approx = true} : vector<8x1xf32> -> vector<8x1xf32>
    %35 = vector.broadcast %34 : vector<8x1xf32> to vector<8x8xf32>
    %36 = arith.mulf %31, %35 : vector<8x8xf32>
    %37 = arith.truncf %36 : vector<8x8xf32> to vector<8x8xbf16>
    %cst_23 = arith.constant dense<0.000000e+00> : vector<8x16xf32>
    %38 = tpu.matmul %37, %23, %cst_23 {dimension_numbers = #tpu.dot_dimension_numbers<[1], [0], [0], [1], [0, 0, 1, 1], [], []>} : vector<8x8xbf16>, vector<8x16xbf16>, vector<8x16xf32> -> vector<8x16xf32>
    %39 = vector.extract_strided_slice %5 {offsets = [0, 16], sizes = [8, 16], strides = [1, 1]} : vector<8x64xf32> to vector<8x16xf32>
    %40 = arith.truncf %39 : vector<8x16xf32> to vector<8x16xbf16>
    %41 = vector.extract_strided_slice %11 {offsets = [0, 16], sizes = [8, 16], strides = [1, 1]} : vector<8x64xf32> to vector<8x16xf32>
    %42 = arith.truncf %41 : vector<8x16xf32> to vector<8x16xbf16>
    %43 = vector.extract_strided_slice %17 {offsets = [0, 16], sizes = [8, 16], strides = [1, 1]} : vector<8x64xf32> to vector<8x16xf32>
    %44 = arith.truncf %43 : vector<8x16xf32> to vector<8x16xbf16>
    %cst_24 = arith.constant dense<0.000000e+00> : vector<8x8xf32>
    %45 = tpu.matmul %40, %42, %cst_24 {dimension_numbers = #tpu.dot_dimension_numbers<[1], [1], [0], [0], [0, 0, 1, 0], [], []>} : vector<8x16xbf16>, vector<8x16xbf16>, vector<8x8xf32> -> vector<8x8xf32>
    %cst_25 = arith.constant 2.500000e-01 : f32
    %46 = vector.broadcast %cst_25 : f32 to vector<8x8xf32>
    %47 = arith.mulf %45, %46 : vector<8x8xf32>
    %cst_26 = arith.constant dense<0xFF800000> : vector<8xf32>
    %48 = vector.multi_reduction <maximumf>, %47, %cst_26 [1] : vector<8x8xf32> to vector<8xf32>
    %49 = vector.shape_cast %48 : vector<8xf32> to vector<8x1xf32>
    %50 = vector.broadcast %49 : vector<8x1xf32> to vector<8x8xf32>
    %51 = arith.subf %47, %50 : vector<8x8xf32>
    %52 = math.exp %51 : vector<8x8xf32>
    %cst_27 = arith.constant dense<0.000000e+00> : vector<8xf32>
    %53 = vector.multi_reduction <add>, %52, %cst_27 [1] : vector<8x8xf32> to vector<8xf32>
    %54 = vector.shape_cast %53 : vector<8xf32> to vector<8x1xf32>
    %55 = tpu.reciprocal %54 {approx = true} : vector<8x1xf32> -> vector<8x1xf32>
    %56 = vector.broadcast %55 : vector<8x1xf32> to vector<8x8xf32>
    %57 = arith.mulf %52, %56 : vector<8x8xf32>
    %58 = arith.truncf %57 : vector<8x8xf32> to vector<8x8xbf16>
    %cst_28 = arith.constant dense<0.000000e+00> : vector<8x16xf32>
    %59 = tpu.matmul %58, %44, %cst_28 {dimension_numbers = #tpu.dot_dimension_numbers<[1], [0], [0], [1], [0, 0, 1, 1], [], []>} : vector<8x8xbf16>, vector<8x16xbf16>, vector<8x16xf32> -> vector<8x16xf32>
    %60 = vector.extract_strided_slice %5 {offsets = [0, 32], sizes = [8, 16], strides = [1, 1]} : vector<8x64xf32> to vector<8x16xf32>
    %61 = arith.truncf %60 : vector<8x16xf32> to vector<8x16xbf16>
    %62 = vector.extract_strided_slice %11 {offsets = [0, 32], sizes = [8, 16], strides = [1, 1]} : vector<8x64xf32> to vector<8x16xf32>
    %63 = arith.truncf %62 : vector<8x16xf32> to vector<8x16xbf16>
    %64 = vector.extract_strided_slice %17 {offsets = [0, 32], sizes = [8, 16], strides = [1, 1]} : vector<8x64xf32> to vector<8x16xf32>
    %65 = arith.truncf %64 : vector<8x16xf32> to vector<8x16xbf16>
    %cst_29 = arith.constant dense<0.000000e+00> : vector<8x8xf32>
    %66 = tpu.matmul %61, %63, %cst_29 {dimension_numbers = #tpu.dot_dimension_numbers<[1], [1], [0], [0], [0, 0, 1, 0], [], []>} : vector<8x16xbf16>, vector<8x16xbf16>, vector<8x8xf32> -> vector<8x8xf32>
    %cst_30 = arith.constant 2.500000e-01 : f32
    %67 = vector.broadcast %cst_30 : f32 to vector<8x8xf32>
    %68 = arith.mulf %66, %67 : vector<8x8xf32>
    %cst_31 = arith.constant dense<0xFF800000> : vector<8xf32>
    %69 = vector.multi_reduction <maximumf>, %68, %cst_31 [1] : vector<8x8xf32> to vector<8xf32>
    %70 = vector.shape_cast %69 : vector<8xf32> to vector<8x1xf32>
    %71 = vector.broadcast %70 : vector<8x1xf32> to vector<8x8xf32>
    %72 = arith.subf %68, %71 : vector<8x8xf32>
    %73 = math.exp %72 : vector<8x8xf32>
    %cst_32 = arith.constant dense<0.000000e+00> : vector<8xf32>
    %74 = vector.multi_reduction <add>, %73, %cst_32 [1] : vector<8x8xf32> to vector<8xf32>
    %75 = vector.shape_cast %74 : vector<8xf32> to vector<8x1xf32>
    %76 = tpu.reciprocal %75 {approx = true} : vector<8x1xf32> -> vector<8x1xf32>
    %77 = vector.broadcast %76 : vector<8x1xf32> to vector<8x8xf32>
    %78 = arith.mulf %73, %77 : vector<8x8xf32>
    %79 = arith.truncf %78 : vector<8x8xf32> to vector<8x8xbf16>
    %cst_33 = arith.constant dense<0.000000e+00> : vector<8x16xf32>
    %80 = tpu.matmul %79, %65, %cst_33 {dimension_numbers = #tpu.dot_dimension_numbers<[1], [0], [0], [1], [0, 0, 1, 1], [], []>} : vector<8x8xbf16>, vector<8x16xbf16>, vector<8x16xf32> -> vector<8x16xf32>
    %81 = vector.extract_strided_slice %5 {offsets = [0, 48], sizes = [8, 16], strides = [1, 1]} : vector<8x64xf32> to vector<8x16xf32>
    %82 = arith.truncf %81 : vector<8x16xf32> to vector<8x16xbf16>
    %83 = vector.extract_strided_slice %11 {offsets = [0, 48], sizes = [8, 16], strides = [1, 1]} : vector<8x64xf32> to vector<8x16xf32>
    %84 = arith.truncf %83 : vector<8x16xf32> to vector<8x16xbf16>
    %85 = vector.extract_strided_slice %17 {offsets = [0, 48], sizes = [8, 16], strides = [1, 1]} : vector<8x64xf32> to vector<8x16xf32>
    %86 = arith.truncf %85 : vector<8x16xf32> to vector<8x16xbf16>
    %cst_34 = arith.constant dense<0.000000e+00> : vector<8x8xf32>
    %87 = tpu.matmul %82, %84, %cst_34 {dimension_numbers = #tpu.dot_dimension_numbers<[1], [1], [0], [0], [0, 0, 1, 0], [], []>} : vector<8x16xbf16>, vector<8x16xbf16>, vector<8x8xf32> -> vector<8x8xf32>
    %cst_35 = arith.constant 2.500000e-01 : f32
    %88 = vector.broadcast %cst_35 : f32 to vector<8x8xf32>
    %89 = arith.mulf %87, %88 : vector<8x8xf32>
    %cst_36 = arith.constant dense<0xFF800000> : vector<8xf32>
    %90 = vector.multi_reduction <maximumf>, %89, %cst_36 [1] : vector<8x8xf32> to vector<8xf32>
    %91 = vector.shape_cast %90 : vector<8xf32> to vector<8x1xf32>
    %92 = vector.broadcast %91 : vector<8x1xf32> to vector<8x8xf32>
    %93 = arith.subf %89, %92 : vector<8x8xf32>
    %94 = math.exp %93 : vector<8x8xf32>
    %cst_37 = arith.constant dense<0.000000e+00> : vector<8xf32>
    %95 = vector.multi_reduction <add>, %94, %cst_37 [1] : vector<8x8xf32> to vector<8xf32>
    %96 = vector.shape_cast %95 : vector<8xf32> to vector<8x1xf32>
    %97 = tpu.reciprocal %96 {approx = true} : vector<8x1xf32> -> vector<8x1xf32>
    %98 = vector.broadcast %97 : vector<8x1xf32> to vector<8x8xf32>
    %99 = arith.mulf %94, %98 : vector<8x8xf32>
    %100 = arith.truncf %99 : vector<8x8xf32> to vector<8x8xbf16>
    %cst_38 = arith.constant dense<0.000000e+00> : vector<8x16xf32>
    %101 = tpu.matmul %100, %86, %cst_38 {dimension_numbers = #tpu.dot_dimension_numbers<[1], [0], [0], [1], [0, 0, 1, 1], [], []>} : vector<8x8xbf16>, vector<8x16xbf16>, vector<8x16xf32> -> vector<8x16xf32>
    %102 = tpu.concatenate %38, %59, %80, %101 in 1 : vector<8x16xf32>, vector<8x16xf32>, vector<8x16xf32>, vector<8x16xf32> -> vector<8x64xf32>
    %103 = arith.truncf %102 : vector<8x64xf32> to vector<8x64xbf16>
    %c0_39 = arith.constant 0 : index
    %c0_40 = arith.constant 0 : index
    %104 = vector.load %arg10[%c0_39, %c0_40] : memref<64x32xbf16, #tpu.memory_space<vmem>>, vector<64x32xbf16>
    %cst_41 = arith.constant dense<0.000000e+00> : vector<8x32xf32>
    %105 = tpu.matmul %103, %104, %cst_41 {dimension_numbers = #tpu.dot_dimension_numbers<[1], [0], [0], [1], [0, 0, 1, 1], [], []>} : vector<8x64xbf16>, vector<64x32xbf16>, vector<8x32xf32> -> vector<8x32xf32>
    %c0_42 = arith.constant 0 : index
    %c0_43 = arith.constant 0 : index
    %106 = vector.load %arg11[%c0_42, %c0_43] : memref<1x32xf32, #tpu.memory_space<vmem>>, vector<1x32xf32>
    %107 = vector.broadcast %106 : vector<1x32xf32> to vector<8x32xf32>
    %108 = arith.addf %105, %107 : vector<8x32xf32>
    %c0_44 = arith.constant 0 : index
    %c0_45 = arith.constant 0 : index
    %109 = vector.load %arg12[%c0_44, %c0_45] : memref<8x32xf32, #tpu.memory_space<vmem>>, vector<8x32xf32>
    tpu.vector_store %arg12[%c0_44, %c0_45], %108 {strides = array<i32>} : memref<8x32xf32, #tpu.memory_space<vmem>>, vector<8x32xf32>,
    return
  }
  func.func @transform_0(%arg0: i32) -> (i32, i32) {
    %c0_i32 = arith.constant 0 : i32
    %c0_i32_0 = arith.constant 0 : i32
    return %arg0, %c0_i32 : i32, i32
  }
  func.func @transform_1(%arg0: i32) -> (i32, i32) {
    %c0_i32 = arith.constant 0 : i32
    %c0_i32_0 = arith.constant 0 : i32
    %c0_i32_1 = arith.constant 0 : i32
    return %c0_i32, %c0_i32_0 : i32, i32
  }
  func.func @transform_2(%arg0: i32) -> (i32, i32) {
    %c0_i32 = arith.constant 0 : i32
    %c0_i32_0 = arith.constant 0 : i32
    %c0_i32_1 = arith.constant 0 : i32
    return %c0_i32, %c0_i32_0 : i32, i32
  }
  func.func @transform_3(%arg0: i32) -> (i32, i32) {
    %c0_i32 = arith.constant 0 : i32
    %c0_i32_0 = arith.constant 0 : i32
    %c0_i32_1 = arith.constant 0 : i32
    return %c0_i32, %c0_i32_0 : i32, i32
  }
  func.func @transform_4(%arg0: i32) -> (i32, i32) {
    %c0_i32 = arith.constant 0 : i32
    %c0_i32_0 = arith.constant 0 : i32
    %c0_i32_1 = arith.constant 0 : i32
    return %c0_i32, %c0_i32_0 : i32, i32
  }
  func.func @transform_5(%arg0: i32) -> (i32, i32) {
    %c0_i32 = arith.constant 0 : i32
    %c0_i32_0 = arith.constant 0 : i32
    %c0_i32_1 = arith.constant 0 : i32
    return %c0_i32, %c0_i32_0 : i32, i32
  }
  func.func @transform_6(%arg0: i32) -> (i32, i32) {
    %c0_i32 = arith.constant 0 : i32
    %c0_i32_0 = arith.constant 0 : i32
    %c0_i32_1 = arith.constant 0 : i32
    return %c0_i32, %c0_i32_0 : i32, i32
  }
  func.func @transform_7(%arg0: i32) -> (i32, i32) {
    %c0_i32 = arith.constant 0 : i32
    %c0_i32_0 = arith.constant 0 : i32
    %c0_i32_1 = arith.constant 0 : i32
    return %c0_i32, %c0_i32_0 : i32, i32
  }
  func.func @transform_8(%arg0: i32) -> (i32, i32) {
    %c0_i32 = arith.constant 0 : i32
    %c0_i32_0 = arith.constant 0 : i32
    %c0_i32_1 = arith.constant 0 : i32
    return %c0_i32, %c0_i32_0 : i32, i32
  }
  func.func @transform_9(%arg0: i32) -> (i32, i32) {
    %c0_i32 = arith.constant 0 : i32
    %c0_i32_0 = arith.constant 0 : i32
    %c0_i32_1 = arith.constant 0 : i32
    return %c0_i32, %c0_i32_0 : i32, i32
  }
  func.func @transform_10(%arg0: i32) -> (i32, i32) {
    %c0_i32 = arith.constant 0 : i32
    %c0_i32_0 = arith.constant 0 : i32
    %c0_i32_1 = arith.constant 0 : i32
    return %c0_i32, %c0_i32_0 : i32, i32
  }
  func.func @transform_11(%arg0: i32) -> (i32, i32) {
    %c0_i32 = arith.constant 0 : i32
    %c0_i32_0 = arith.constant 0 : i32
    return %arg0, %c0_i32 : i32, i32
  }
}

</mosaic_0001>

<bundles_post_ra>
// kernel: tpu_custom_call.1
= control target key start
LH: loop header
LB: loop body
LE: loop exit
PB: predicated region body
PF: predicated region fallthrough
CT: control target
= control target key end

     0   :  { %16 = vsyncpa [#allocation3], 0  ;;  %s1312_s0 = inlined_call_operand.hbm [shape: bf16[8,32], index: 0, kind: input, shape index: {}]   ;;  %s1313_s1 = inlined_call_operand.hbm [shape: bf16[8,32], index: 1, kind: input, shape index: {}]   ;;  %s1314_s2 = inlined_call_operand.vmem [shape: bf16[8,32], index: 2, kind: input, shape index: {}]   ;;  %s1315_s3 = inlined_call_operand.vmem [shape: bf16[32,64], index: 3, kind: input, shape index: {}]   ;;  %s1316_s4 = inlined_call_operand.vmem [shape: f32[1,64], index: 4, kind: input, shape index: {}]   ;;  %s1317_s5 = inlined_call_operand.vmem [shape: bf16[32,64], index: 5, kind: input, shape index: {}]   ;;  %s1318_s6 = inlined_call_operand.vmem [shape: f32[1,64], index: 6, kind: input, shape index: {}]   ;;  %s1319_s7 = inlined_call_operand.vmem [shape: bf16[32,64], index: 7, kind: input, shape index: {}]   ;;  %s1320_s8 = inlined_call_operand.vmem [shape: f32[1,64], index: 8, kind: input, shape index: {}]   ;;  %s1321_s9 = inlined_call_operand.vmem [shape: bf16[64,32], index: 9, kind: input, shape index: {}]   ;;  %s1322_s10 = inlined_call_operand.vmem [shape: f32[1,32], index: 10, kind: input, shape index: {}]   ;;  %s1323_s11 = inlined_call_operand.hbm [shape: f32[8,32], index: 11, kind: output, shape index: {}]  }
   0x1   :  { %17 = vsyncpa [#allocation6], 0 }
   0x2   :  { %18 = vsyncpa [#allocation4], 0  ;;  %s1079_s17 = smov [#allocation2]   ;;  %s1080_s19 = smov [#allocation5]  }
   0x3   :  { %s25_s18 = sshll.u32 %s1079_s17, 4  ;;  %s35_s20 = sshll.u32 %s1080_s19, 4  ;;  %s26_s18 = int_to_ptr.vmem [resolvable:$true] %s25_s18  ;;  %s36_s20 = int_to_ptr.vmem [resolvable:$true] %s35_s20 }
   0x4   :  { %s1007_s23 = scalar_lea.hbm %s1312_s0, 64 }
   0x5   :  { %p1008_p0 = scmp.ne.s32.totalorder %s1312_s0, %s1007_s23  ;;  %p1011_p1 = scmp.lt.u32.totalorder %s1007_s23, %s1312_s0 }
   0x7   :  { %p1013_p2 = pnand %p1011_p1, %p1008_p0 }
   0x9   :  { %1016 = shalt.err (!%p1013_p2)
}
   0xa   :  { %s1017_s28 = scalar_lea.vmem %s26_s18, 64  ;;  %p1022_p4 = scmp.lt.s32.totalorder %s26_s18, %s26_s18 }
   0xb   :  { %p1018_p3 = scmp.ne.s32.totalorder %s26_s18, %s1017_s28  ;;  %p1023_p5 = scmp.lt.s32.totalorder %s1017_s28, %s1017_s28 }
   0xd   :  { %p1024_p6 = por %p1023_p5, %p1022_p4 }
   0xf   :  { %p1025_p7 = pnand %p1024_p6, %p1018_p3 }
  0x11   :  { %1028 = shalt.err (!%p1025_p7)
}
  0x12   :  { %28 = dma.hbm_to_vmem [thread:$0]  %s1312_s0, 64, %s26_s18, [#allocation3]  }
  0x13   :  { %s1029_s14 = scalar_lea.hbm %s1313_s1, 64 }
  0x14   :  { %p1030_p8 = scmp.ne.s32.totalorder %s1313_s1, %s1029_s14  ;;  %p1033_p9 = scmp.lt.u32.totalorder %s1029_s14, %s1313_s1 }
  0x16   :  { %p1035_p10 = pnand %p1033_p9, %p1030_p8 }
  0x18   :  { %1038 = shalt.err (!%p1035_p10)
}
  0x19   :  { %s1039_s21 = scalar_lea.vmem %s36_s20, 64  ;;  %p1044_p12 = scmp.lt.s32.totalorder %s36_s20, %s36_s20 }
  0x1a   :  { %p1040_p11 = scmp.ne.s32.totalorder %s36_s20, %s1039_s21  ;;  %p1045_p13 = scmp.lt.s32.totalorder %s1039_s21, %s1039_s21 }
  0x1c   :  { %p1046_p0 = por %p1045_p13, %p1044_p12 }
  0x1e   :  { %p1047_p1 = pnand %p1046_p0, %p1040_p11 }
  0x20   :  { %1050 = shalt.err (!%p1047_p1)
}
  0x21   :  { %38 = dma.hbm_to_vmem [thread:$0]  %s1313_s1, 64, %s36_s20, [#allocation6]  }
  0x22   :  { %1073 = dma.done.wait [#allocation3], 64  }
  0x23   :  { %1074 = vsyncadd [#allocation3], 4294967232 }
  0x24   :  { %1075 = dma.done.wait [#allocation6], 64  }
  0x25   :  { %1076 = vsyncadd [#allocation6], 4294967232  ;;  %v1081_v0 = vmov 0.0   ;;  %vm1082_vm0 = vmmov 0   ;;  %v981_v1 = vld [vmem:[%s1317_s5] sm:$0xff]   ;;  %v983_v3 = vld [vmem:[%s1317_s5 + $0x8] sm:$0xff]  }
  0x26   :  { %894 = vmatprep.subr.bf16.mxu1 %v1081_v0  ;;  %886 = vmatprep.subr.bf16.mxu0 %v1081_v0  ;;  %v982_v2 = vld [vmem:[%s1315_s3] sm:$0xff]   ;;  %vm88_vm1 = vcmask 261120   ;;  %v984_v5 = vld [vmem:[%s1315_s3 + $0x8] sm:$0xff]   ;;  %vm269_vm2 = vcmask 130048   ;;  %s1083_s30 = smov 96   ;;  %vm317_vm3 = vcmask 64512  }
  0x27   :  { %898 = vmatprep.mubr.msk.bf16.mxu1 %vm1082_vm0, %v1081_v0  ;;  %890 = vmatprep.mubr.msk.bf16.mxu0 %vm1082_vm0, %v1081_v0  ;;  %v132_v4 = vld [vmem:[#allocation5] sm:$0xf]  ;;  %v64_v6 = vld [vmem:[#allocation2] sm:$0xf]  ;;  %v986_v23 = vld [vmem:[%s1319_s7 + $0x8] sm:$0xff]   ;;  %vm333_vm4 = vcmask 1043456  }
  0x28   :  { %895 = vmatpush3.bf16.msra.mxu1 %v981_v1  ;;  %887 = vmatpush3.bf16.msra.mxu0 %v982_v2  ;;  %v834_v7 = vld [vmem:[%s1318_s6] ss:$0 sm:$0xff]  ;;  %s1084_s6 = smov 112   ;;  %s1086_s23 = smov 16   ;;  %vm727_vm5 = vcmask 392192   ;;  %vm769_vm6 = vcmask 523264  }
  0x29   :  { %896 = vmatprep.subr.bf16.mxu1 %v1081_v0  ;;  %888 = vmatprep.subr.bf16.mxu0 %v1081_v0  ;;  %v830_v8 = vld [vmem:[%s1316_s4] ss:$0 sm:$0xff]  ;;  %s1085_s4 = smov 80   ;;  %s1087_s24 = smov 32  }
  0x2a   :  { %v985_v22 = vld [vmem:[%s1319_s7] sm:$0xff]   ;;  %s1088_s25 = smov 48   ;;  %s1089_s27 = smov [#allocation7]  }
  0x2b   :  { %v199_v24 = vld [vmem:[%s1314_s2] sm:$0xf]  ;;  %s820_s5 = sshll.u32 %s1089_s27, 4  ;;  %s821_s5 = int_to_ptr.vmem [resolvable:$true] %s820_s5 }
  0x2c   :  { %897 = vmatpush3.bf16.msra.mxu1 %v983_v3  ;;  %889 = vmatpush3.bf16.msra.mxu0 %v984_v5  ;;  %v838_v40 = vld [vmem:[%s1320_s8] ss:$0 sm:$0xff]  ;;  %s1051_s28 = scalar_lea.vmem %s821_s5, 128  ;;  %p1056_p3 = scmp.lt.s32.totalorder %s821_s5, %s821_s5 }
  0x2d   :  { %910 = vmatprep.subr.bf16.mxu1 %v1081_v0  ;;  %902 = vmatprep.subr.bf16.mxu0 %v1081_v0  ;;  %p1052_p2 = scmp.ne.s32.totalorder %s821_s5, %s1051_s28  ;;  %p1057_p4 = scmp.lt.s32.totalorder %s1051_s28, %s1051_s28 }
  0x2f   :  { %899 = vmatmul.mubr.msk.bf16.vlgmr.msra.gmra.mrb[0].mxu1 %vm88_vm1, %v132_v4  ;;  %891 = vmatmul.mubr.msk.bf16.vlgmr.msra.gmra.mrb[0].mxu0 %vm88_vm1, %v64_v6  ;;  %p1058_p5 = por %p1057_p4, %p1056_p3 }
  0x30   :  { %912 = vmatprep.mubr.msk.bf16.mxu1 %vm1082_vm0, %v1081_v0  ;;  %906 = vmatprep.mubr.msk.bf16.mxu0 %vm1082_vm0, %v1081_v0 }
  0x31   :  { %903 = vmatpush3.bf16.msra.mxu0 %v985_v22  ;;  %p1059_p6 = pnand %p1058_p5, %p1052_p2 }
  0x32   :  { %904 = vmatprep.subr.bf16.mxu0 %v1081_v0 }
  0x35   :  { %905 = vmatpush3.bf16.msra.mxu0 %v986_v23 }
  0x36   :  { %916 = vmatprep.subr.bf16.mxu0 %v1081_v0 }
  0x38   :  { %907 = vmatmul.mubr.msk.bf16.vlgmr.msra.gmra.mrb[4].mxu0 %vm88_vm1, %v199_v24 }
  0x39   :  { %918 = vmatprep.mubr.msk.bf16.mxu0 %vm1082_vm0, %v1081_v0 }
 0x102   :  { %v193_v9 = vpop.f32.mrb[0].mxu1  ;;  %v126_v12 = vpop.f32.mrb[0].mxu0 }
 0x103   :  { %v194_v10 = vadd.f32 %v834_v7, %v193_v9  ;;  %v900_v11 = vpop.f32.mrb[1].mxu1  ;;  %v127_v14 = vadd.f32 %v830_v8, %v126_v12  ;;  %v892_v15 = vpop.f32.mrb[1].mxu0 }
 0x104   :  { %v196_v13 = vpop.f32.mrb[2].mxu1  ;;  %v129_v18 = vpop.f32.mrb[2].mxu0 }
 0x105   :  { %v267_v16 = vpack.c.bf16 %v194_v10, %v194_v10  ;;  %v901_v17 = vpop.f32.mrb[3].mxu1  ;;  %v893_v19 = vpop.f32.mrb[3].mxu0  ;;  %v266_v20 = vpack.c.bf16 %v127_v14, %v127_v14 }
 0x107   :  { %493 = vrot.lane.b32.xlu1 %v267_v16, %s1083_s30  ;;  %381 = vrot.lane.b32.xlu0 %v267_v16, %s1084_s6  ;;  %v274_v21 = vsel %vm269_vm2, %v267_v16, 0 }
 0x108   :  { %911 = vmatpush3.bf16.xpose.msra.mxu1 %v274_v21 }
 0x109   :  { %922 = vmatprep.subr.bf16.mxu1 %v1081_v0 }
 0x10b   :  { %491 = vrot.lane.b32.xlu1 %v266_v20, %s1083_s30  ;;  %378 = vrot.lane.b32.xlu0 %v266_v20, %s1084_s6  ;;  %v260_v41 = vpop.f32.mrb[4].mxu0 }
 0x10c   :  { %v261_v42 = vadd.f32 %v838_v40, %v260_v41  ;;  %v908_v43 = vpop.f32.mrb[5].mxu0 }
 0x10d   :  { %v263_v44 = vpop.f32.mrb[6].mxu0 }
 0x10e   :  { %v268_v45 = vpack.c.bf16 %v261_v42, %v261_v42  ;;  %v909_v46 = vpop.f32.mrb[7].mxu0 }
 0x10f   :  { %602 = vrot.lane.b32.xlu1 %v266_v20, %s1085_s4  ;;  %604 = vrot.lane.b32.xlu0 %v267_v16, %s1085_s4 }
 0x110   :  { %913 = vmatmul.mubr.msk.bf16.vlgmr.msra.gmra.mrb[4].mxu1 %vm269_vm2, %v266_v20  ;;  %v335_v47 = vsel %vm333_vm4, %v268_v45, 0 }
 0x111   :  { %924 = vmatprep.mubr.msk.bf16.mxu1 %vm1082_vm0, %v1081_v0  ;;  %917 = vmatpush3.bf16.msra.mxu0 %v335_v47 }
 0x112   :  { %928 = vmatprep.subr.bf16.mxu0 %v1081_v0 }
 0x179   :  { %v382_v25 = vpop.permute.xlu0 %381  ;;  %v494_v27 = vpop.permute.xlu1 %493 }
 0x17a   :  { %v387_v26 = vsel %vm269_vm2, %v382_v25, 0  ;;  %v499_v29 = vsel %vm269_vm2, %v494_v27, 0 }
 0x17b   :  { %923 = vmatpush3.bf16.xpose.msra.mxu1 %v387_v26 }
 0x17c   :  { %934 = vmatprep.subr.bf16.mxu1 %v1081_v0 }
 0x17d   :  { %v379_v28 = vpop.permute.xlu0 %378  ;;  %v492_v31 = vpop.permute.xlu1 %491 }
 0x181   :  { %v605_v30 = vpop.permute.xlu0 %604  ;;  %v603_v33 = vpop.permute.xlu1 %602 }
 0x182   :  { %925 = vmatmul.mubr.msk.bf16.vlgmr.msra.gmra.mrb[8].mxu1 %vm269_vm2, %v379_v28  ;;  %v610_v32 = vsel %vm269_vm2, %v605_v30, 0 }
 0x183   :  { %935 = vmatpush3.bf16.xpose.msra.mxu1 %v499_v29  ;;  %936 = vmatprep.mubr.msk.bf16.mxu1 %vm1082_vm0, %v1081_v0 }
 0x184   :  { %946 = vmatprep.subr.bf16.mxu1 %v1081_v0 }
 0x18a   :  { %937 = vmatmul.mubr.msk.bf16.vlgmr.msra.gmra.mrb[12].mxu1 %vm269_vm2, %v492_v31 }
 0x18b   :  { %947 = vmatpush3.bf16.xpose.msra.mxu1 %v610_v32  ;;  %948 = vmatprep.mubr.msk.bf16.mxu1 %vm1082_vm0, %v1081_v0 }
 0x18c   :  { %958 = vmatprep.subr.bf16.mxu1 %v1081_v0 }
 0x192   :  { %949 = vmatmul.mubr.msk.bf16.vlgmr.msra.gmra.mrb[16].mxu1 %vm269_vm2, %v603_v33 }
 0x193   :  { %966 = vmatprep.mubr.msk.bf16.mxu1 %vm1082_vm0, %v1081_v0 }
 0x1e3   :  { %v310_v34 = vpop.f32.mrb[4].mxu1 }
 0x1e4   :  { %v316_v35 = vmul.f32 0.25, %v310_v34  ;;  %v914_v36 = vpop.f32.mrb[5].mxu1 }
 0x1e5   :  { %v313_v37 = vpop.f32.mrb[6].mxu1 }
 0x1e6   :  { %v915_v38 = vpop.f32.mrb[7].mxu1  ;;  %v318_v39 = vsel %vm317_vm3, %v316_v35, -inf }
 0x1e7   :  { %319 = vmax.xlane.f32.xlu0 %v318_v39 }
 0x255   :  { %v423_v48 = vpop.f32.mrb[8].mxu1 }
 0x256   :  { %v429_v49 = vmul.f32 0.25, %v423_v48  ;;  %v926_v50 = vpop.f32.mrb[9].mxu1 }
 0x257   :  { %v426_v51 = vpop.f32.mrb[10].mxu1  ;;  %v988_v50 = vld [vmem:[%s1321_s9 + $0x8] sm:$0xff]  }
 0x258   :  { %v927_v52 = vpop.f32.mrb[11].mxu1  ;;  %v430_v53 = vsel %vm317_vm3, %v429_v49, -inf  ;;  %v989_v51 = vld [vmem:[%s1321_s9 + $0x10] sm:$0xff]  }
 0x259   :  { %431 = vmax.xlane.f32.xlu1 %v430_v53 }
 0x25d   :  { %v535_v54 = vpop.f32.mrb[12].mxu1 }
 0x25e   :  { %v541_v55 = vmul.f32 0.25, %v535_v54  ;;  %v938_v56 = vpop.f32.mrb[13].mxu1 }
 0x25f   :  { %v538_v57 = vpop.f32.mrb[14].mxu1  ;;  %v990_v56 = vld [vmem:[%s1321_s9 + $0x18] sm:$0xff]  }
 0x260   :  { %v939_v58 = vpop.f32.mrb[15].mxu1  ;;  %v542_v59 = vsel %vm317_vm3, %v541_v55, -inf }
 0x261   :  { %543 = vmax.xlane.f32.xlu0 %v542_v59 }
 0x265   :  { %v646_v60 = vpop.f32.mrb[16].mxu1 }
 0x266   :  { %v652_v61 = vmul.f32 0.25, %v646_v60  ;;  %v950_v62 = vpop.f32.mrb[17].mxu1 }
 0x267   :  { %v649_v63 = vpop.f32.mrb[18].mxu1 }
 0x268   :  { %v951_v1 = vpop.f32.mrb[19].mxu1  ;;  %v653_v2 = vsel %vm317_vm3, %v652_v61, -inf }
 0x269   :  { %654 = vmax.xlane.f32.xlu0 %v653_v2 }
 0x274   :  { %v320_v3 = vpop.xlane.xlu0 %319 }
 0x275   :  { %v321_v4 = vsub.f32 %v316_v35, %v320_v3 }
 0x277   :  { %v322_v5 = vmul.f32 1.442695, %v321_v4 }
 0x279   :  { %991 = vpow2.f32 %v322_v5 }
 0x283   :  { %v992_v6 = vpop.eup %991 }
 0x284   :  { %v324_v7 = vsel %vm317_vm3, %v992_v6, 0.0 }
 0x285   :  { %325 = vadd.xlane.f32.xlu1 %v324_v7 }
 0x296   :  { %443 = vrot.lane.b32.xlu1 %v268_v45, %s1084_s6 }
 0x2e6   :  { %v432_v8 = vpop.xlane.xlu1 %431 }
 0x2e7   :  { %v433_v9 = vsub.f32 %v429_v49, %v432_v8  ;;  %v987_v49 = vld [vmem:[%s1321_s9] sm:$0xff]  }
 0x2e8   :  { %959 = vmatpush3.bf16.msra.mxu1 %v987_v49  ;;  %v850_v8 = vld [vmem:[%s1322_s10] ss:$0 sm:$0xff] }
 0x2e9   :  { %v434_v10 = vmul.f32 1.442695, %v433_v9  ;;  %960 = vmatprep.subr.bf16.mxu1 %v1081_v0 }
 0x2eb   :  { %993 = vpow2.f32 %v434_v10 }
 0x2ec   :  { %961 = vmatpush3.bf16.msra.mxu1 %v988_v50 }
 0x2ed   :  { %962 = vmatprep.subr.bf16.mxu1 %v1081_v0 }
 0x2ee   :  { %v544_v11 = vpop.xlane.xlu0 %543 }
 0x2ef   :  { %v545_v12 = vsub.f32 %v541_v55, %v544_v11 }
 0x2f0   :  { %963 = vmatpush3.bf16.msra.mxu1 %v989_v51 }
 0x2f1   :  { %v546_v13 = vmul.f32 1.442695, %v545_v12  ;;  %964 = vmatprep.subr.bf16.mxu1 %v1081_v0 }
 0x2f3   :  { %995 = vpow2.f32 %v546_v13 }
 0x2f4   :  { %965 = vmatpush3.bf16.msra.mxu1 %v990_v56 }
 0x2f5   :  { %v994_v14 = vpop.eup %993 }
 0x2f6   :  { %v655_v15 = vpop.xlane.xlu0 %654  ;;  %v436_v16 = vsel %vm317_vm3, %v994_v14, 0.0 }
 0x2f7   :  { %v656_v17 = vsub.f32 %v652_v61, %v655_v15  ;;  %437 = vadd.xlane.f32.xlu0 %v436_v16 }
 0x2f9   :  { %v657_v18 = vmul.f32 1.442695, %v656_v17 }
 0x2fb   :  { %997 = vpow2.f32 %v657_v18 }
 0x2fd   :  { %v996_v19 = vpop.eup %995 }
 0x2fe   :  { %v548_v20 = vsel %vm317_vm3, %v996_v19, 0.0 }
 0x2ff   :  { %549 = vadd.xlane.f32.xlu1 %v548_v20 }
 0x305   :  { %v998_v21 = vpop.eup %997 }
 0x306   :  { %v659_v22 = vsel %vm317_vm3, %v998_v21, 0.0 }
 0x307   :  { %660 = vadd.xlane.f32.xlu0 %v659_v22 }
 0x310   :  { %665 = vrot.lane.b32.xlu1 %v268_v45, %s1085_s4 }
 0x312   :  { %v326_v23 = vpop.xlane.xlu1 %325 }
 0x313   :  { %999 = vrcp.f32 %v326_v23 }
 0x316   :  { %v444_v25 = vpop.permute.xlu1 %443 }
 0x317   :  { %v449_v28 = vsel %vm333_vm4, %v444_v25, 0 }
 0x31d   :  { %v1000_v24 = vpop.eup %999  ;;  %554 = vrot.lane.b32.xlu0 %v268_v45, %s1083_s30 }
 0x31e   :  { %v328_v26 = vmul.f32 %v1000_v24, %v992_v6 }
 0x320   :  { %v329_v27 = vpack.c.bf16 %v328_v26, %v328_v26 }
 0x322   :  { %919 = vmatmul.mubr.msk.bf16.vlgmr.msra.gmra.mrb[8].mxu0 %vm317_vm3, %v329_v27 }
 0x323   :  { %929 = vmatpush3.bf16.msra.mxu0 %v449_v28  ;;  %930 = vmatprep.mubr.msk.bf16.mxu0 %vm1082_vm0, %v1081_v0 }
 0x324   :  { %940 = vmatprep.subr.bf16.mxu0 %v1081_v0 }
 0x384   :  { %v438_v29 = vpop.xlane.xlu0 %437 }
 0x385   :  { %1001 = vrcp.f32 %v438_v29 }
 0x38c   :  { %v550_v30 = vpop.xlane.xlu1 %549 }
 0x38d   :  { %1003 = vrcp.f32 %v550_v30 }
 0x38f   :  { %v1002_v31 = vpop.eup %1001 }
 0x390   :  { %v440_v32 = vmul.f32 %v1002_v31, %v994_v14  ;;  %v666_v39 = vpop.permute.xlu1 %665 }
 0x391   :  { %v671_v41 = vsel %vm333_vm4, %v666_v39, 0 }
 0x392   :  { %v441_v33 = vpack.c.bf16 %v440_v32, %v440_v32 }
 0x394   :  { %v661_v34 = vpop.xlane.xlu0 %660  ;;  %931 = vmatmul.mubr.msk.bf16.vlgmr.msra.gmra.mrb[12].mxu0 %vm317_vm3, %v441_v33 }
 0x395   :  { %1005 = vrcp.f32 %v661_v34  ;;  %942 = vmatprep.mubr.msk.bf16.mxu0 %vm1082_vm0, %v1081_v0 }
 0x397   :  { %v1004_v35 = vpop.eup %1003 }
 0x398   :  { %v552_v36 = vmul.f32 %v1004_v35, %v996_v19  ;;  %v555_v37 = vpop.permute.xlu0 %554 }
 0x399   :  { %v560_v38 = vsel %vm333_vm4, %v555_v37, 0 }
 0x39a   :  { %941 = vmatpush3.bf16.msra.mxu0 %v560_v38  ;;  %v553_v40 = vpack.c.bf16 %v552_v36, %v552_v36 }
 0x39b   :  { %952 = vmatprep.subr.bf16.mxu0 %v1081_v0 }
 0x39d   :  { %943 = vmatmul.mubr.msk.bf16.vlgmr.msra.gmra.mrb[16].mxu0 %vm317_vm3, %v553_v40 }
 0x39e   :  { %953 = vmatpush3.bf16.msra.mxu0 %v671_v41  ;;  %954 = vmatprep.mubr.msk.bf16.mxu0 %vm1082_vm0, %v1081_v0 }
 0x39f   :  { %v1006_v42 = vpop.eup %1005 }
 0x3a0   :  { %v663_v43 = vmul.f32 %v1006_v42, %v998_v21 }
 0x3a2   :  { %v664_v44 = vpack.c.bf16 %v663_v43, %v663_v43 }
 0x3a5   :  { %955 = vmatmul.mubr.msk.bf16.vlgmr.msra.gmra.mrb[20].mxu0 %vm317_vm3, %v664_v44 }
 0x3f5   :  { %v371_v45 = vpop.f32.mrb[8].mxu0 }
 0x3f6   :  { %v920_v46 = vpop.f32.mrb[9].mxu0 }
 0x3f7   :  { %v374_v47 = vpop.f32.mrb[10].mxu0 }
 0x3f8   :  { %v921_v48 = vpop.f32.mrb[11].mxu0 }
 0x467   :  { %v485_v52 = vpop.f32.mrb[12].mxu0 }
 0x468   :  { %714 = vrot.lane.b32.xlu1 %v485_v52, %s1086_s23  ;;  %v932_v53 = vpop.f32.mrb[13].mxu0 }
 0x469   :  { %v488_v54 = vpop.f32.mrb[14].mxu0 }
 0x46a   :  { %v933_v55 = vpop.f32.mrb[15].mxu0 }
 0x470   :  { %v596_v57 = vpop.f32.mrb[16].mxu0 }
 0x471   :  { %718 = vrot.lane.b32.xlu0 %v596_v57, %s1087_s24  ;;  %v944_v58 = vpop.f32.mrb[17].mxu0 }
 0x472   :  { %v599_v59 = vpop.f32.mrb[18].mxu0 }
 0x473   :  { %v945_v60 = vpop.f32.mrb[19].mxu0 }
 0x478   :  { %v707_v61 = vpop.f32.mrb[20].mxu0 }
 0x479   :  { %722 = vrot.lane.b32.xlu1 %v707_v61, %s1088_s25  ;;  %v956_v62 = vpop.f32.mrb[21].mxu0 }
 0x47a   :  { %v710_v63 = vpop.f32.mrb[22].mxu0 }
 0x47b   :  { %v957_v1 = vpop.f32.mrb[23].mxu0 }
 0x4da   :  { %v715_v2 = vpop.permute.xlu1 %714 }
 0x4db   :  { %v725_v0 = vsel %vm269_vm2, %v371_v45, %v715_v2 }
 0x4e3   :  { %v719_v3 = vpop.permute.xlu0 %718 }
 0x4e4   :  { %v726_v4 = vsel %vm88_vm1, %v725_v0, %v719_v3 }
 0x4eb   :  { %v723_v5 = vpop.permute.xlu1 %722 }
 0x4ec   :  { %v728_v6 = vsel %vm727_vm5, %v726_v4, %v723_v5 }
 0x4ed   :  { %v729_v7 = vpack.c.bf16 %v728_v6, %v728_v6 }
 0x4ef   :  { %967 = vmatmul.mubr.msk.bf16.vlgmr.msra.gmra.mrb[20].mxu1 %vm769_vm6, %v729_v7 }
 0x5c2   :  { %v807_v9 = vpop.f32.mrb[20].mxu1 }
 0x5c3   :  { %v808_v10 = vadd.f32 %v850_v8, %v807_v9  ;;  %v968_v11 = vpop.f32.mrb[21].mxu1 }
 0x5c4   :  { %v810_v12 = vpop.f32.mrb[22].mxu1 }
 0x5c5   :  { %813 = vst.msk [vmem:[#allocation7] sm:$0xff] %vm88_vm1, %v808_v10  ;;  %v969_v13 = vpop.f32.mrb[23].mxu1 }
 0x5c6   :  { %1062 = shalt.err (!%p1059_p6)
}
 0x5c7   :  { %s1063_s10 = scalar_lea.hbm %s1323_s11, 128 }
 0x5c8   :  { %p1064_p7 = scmp.ne.s32.totalorder %s1323_s11, %s1063_s10  ;;  %p1067_p8 = scmp.lt.u32.totalorder %s1063_s10, %s1323_s11 }
 0x5ca   :  { %p1069_p9 = pnand %p1067_p8, %p1064_p7 }
 0x5cc   :  { %1072 = shalt.err (!%p1069_p9)
}
 0x5cd   :  { %823 = dma.vmem_to_hbm [thread:$0]  %s821_s5, 128, %s1323_s11, [#allocation4]  }
 0x5ce   :  { %1077 = dma.done.wait [#allocation4], 128  }
 0x5cf   :  { %1078 = vsyncadd [#allocation4], 4294967168 }
 0x5d0   :  { %827 = vsyncpa [#allocation3], 1 }
 0x5d1   :  { %828 = vsyncpa [#allocation6], 1 }
 0x5d2   :  { %829 = vsyncpa [#allocation4], 1 }

</bundles_post_ra>
